<compile_context>
chip_gen: v5e
topology: v5e:2x2
jax: 0.10.0
libtpu: 0.0.40
codegen_flags: <defaults>
</compile_context>

<pallas_src>
import jax
import jax.numpy as jnp
from jax.experimental import pallas as pl
from jax.experimental.pallas import tpu as pltpu

LANE = 128
SUBLANE = 8
MXU_GRANULE = 256            # rows per MXU pass on v6e/v7x (128 on v5e)
DEFAULT_BATCH_TILE = 1024    # >=1024: per-step MXU work >> ~0.35us grid-step overhead


def _cdiv(a, b):
    return (a + b - 1) // b


def _round_up(x, m):
    return _cdiv(x, m) * m


# -----------------------------------------------------------------------------
# Kernel
# -----------------------------------------------------------------------------
def _mlp_kernel(x_ref, w1_ref, b1_ref, w2_ref, b2_ref,
                w3_ref, b3_ref, w4_ref, b4_ref, o_ref):
    # Entire MLP hot path inside the kernel: bf16 MXU matmuls with f32
    # accumulation; bias add / ReLU on the VPU in f32.
    x = x_ref[...]                       # (TB, Din_p) bf16

    # Hoisted bias loads (one (1, N) broadcast each per kernel body).
    b1 = b1_ref[...]
    b2 = b2_ref[...]
    b3 = b3_ref[...]
    b4 = b4_ref[...]

    h1 = jnp.dot(x, w1_ref[...], preferred_element_type=jnp.float32) + b1
    h1 = jnp.maximum(h1, 0.0).astype(jnp.bfloat16)

    h2 = jnp.dot(h1, w2_ref[...], preferred_element_type=jnp.float32) + b2
    h2 = jnp.maximum(h2, 0.0).astype(jnp.bfloat16)

    h3 = jnp.dot(h2, w3_ref[...], preferred_element_type=jnp.float32) + b3
    h3 = jnp.maximum(h3, 0.0).astype(jnp.bfloat16)

    h4 = jnp.dot(h3, w4_ref[...], preferred_element_type=jnp.float32) + b4

    o_ref[...] = h4.astype(o_ref.dtype)


# -----------------------------------------------------------------------------
# Tiling / VMEM heuristics
# -----------------------------------------------------------------------------
def _vmem_limit_bytes():
    """Generation-aware scoped-VMEM budget: ~half of physical, in [32, 64] MiB."""
    try:
        phys = pltpu.get_tpu_info().vmem_capacity_bytes
    except Exception:
        phys = 64 * 1024 * 1024           # conservative fallback (v7x-sized)
    return int(max(32 * 1024 * 1024, min(64 * 1024 * 1024, phys // 2)))


def _activation_vmem_bytes(tb, din_p, d1p, d2p, dhp, dop):
    # Double-buffered bf16 input tile + double-buffered f32 output tile.
    io = 2 * tb * din_p * 2 + 2 * tb * dop * 4
    # f32 + bf16 copies of the hidden activations live inside one kernel body.
    hidden = tb * (d1p + d2p + dhp) * (4 + 2)
    return io + hidden


def _resident_weight_bytes(din_p, d1p, d2p, dhp, dop):
    w = (din_p * d1p + d1p * d2p + d2p * dhp + dhp * dop) * 2   # bf16, single-buffered
    b = (d1p + d2p + dhp + dop) * 4                             # f32
    return w + b


def _choose_batch_tiling(batch, batch_tile):
    """Balanced batch tiles: padding bounded by a small granule, not by TB."""
    tb_max = max(SUBLANE, _round_up(batch_tile, MXU_GRANULE))
    # Prefer >=2 grid steps for mid/large batches so the batch axis can shard
    # across both v7x TensorCores (one extra ~0.35us step elsewhere: harmless).
    min_tiles = 2 if batch >= 2 * MXU_GRANULE else 1
    n_tiles = max(_cdiv(batch, tb_max), min_tiles)
    per_tile = _cdiv(batch, n_tiles)
    if per_tile >= 1024:
        granule = MXU_GRANULE
    elif per_tile >= LANE:
        granule = LANE
    else:
        granule = SUBLANE
    tb = _round_up(per_tile, granule)
    n_tiles = max(_cdiv(batch, tb), min_tiles)
    return tb, n_tiles


# -----------------------------------------------------------------------------
# Parameter preparation (pad + cast ONCE, hoisted out of the forward path)
# -----------------------------------------------------------------------------
def prepare_params(params):
    """Pad feature dims to multiples of 128 and cast to bf16/f32 once."""
    w1, b1 = params["w1"], params["b1"]
    w2, b2 = params["w2"], params["b2"]
    w3, b3 = params["w3"], params["b3"]
    w4, b4 = params["w4"], params["b4"]

    input_dim, d1 = w1.shape
    d2 = w2.shape[1]
    dh = w3.shape[1]
    do = w4.shape[1]

    din_p = _round_up(input_dim, LANE)
    d1_p = _round_up(d1, LANE)
    d2_p = _round_up(d2, LANE)
    dh_p = _round_up(dh, LANE)
    do_p = _round_up(do, LANE)

    def pad2(a, rows, cols):
        return jnp.pad(a, ((0, rows - a.shape[0]), (0, cols - a.shape[1])))

    arrays = dict(
        w1=pad2(w1, din_p, d1_p).astype(jnp.bfloat16),
        b1=pad2(b1.reshape(1, d1), 1, d1_p).astype(jnp.float32),
        w2=pad2(w2, d1_p, d2_p).astype(jnp.bfloat16),
        b2=pad2(b2.reshape(1, d2), 1, d2_p).astype(jnp.float32),
        w3=pad2(w3, d2_p, dh_p).astype(jnp.bfloat16),
        b3=pad2(b3.reshape(1, dh), 1, dh_p).astype(jnp.float32),
        w4=pad2(w4, dh_p, do_p).astype(jnp.bfloat16),
        b4=pad2(b4.reshape(1, do), 1, do_p).astype(jnp.float32),
    )
    dims = dict(input_dim=input_dim, do=do)
    return arrays, dims


# -----------------------------------------------------------------------------
# Forward
# -----------------------------------------------------------------------------
def neural_network_forward(x, prepared, *, batch_tile=DEFAULT_BATCH_TILE):
    """x: (B, ...) flattened to (B, input_dim); prepared = prepare_params(params)."""
    arrays, dims = prepared
    w1p, b1p = arrays["w1"], arrays["b1"]
    w2p, b2p = arrays["w2"], arrays["b2"]
    w3p, b3p = arrays["w3"], arrays["b3"]
    w4p, b4p = arrays["w4"], arrays["b4"]

    B = x.shape[0]
    x2d = x.reshape(B, -1).astype(jnp.float32)        # nn.Flatten()
    if x2d.shape[1] != dims["input_dim"]:
        raise ValueError(
            f"flattened input dim {x2d.shape[1]} != expected {dims['input_dim']}")

    din_p, d1_p = w1p.shape
    d2_p = w2p.shape[1]
    dh_p = w3p.shape[1]
    do_p = w4p.shape[1]

    vmem_limit = _vmem_limit_bytes()
    weight_bytes = _resident_weight_bytes(din_p, d1_p, d2_p, dh_p, do_p)
    if weight_bytes > vmem_limit // 2:
        # TODO(synk): K-tile the first layer (extra "arbitrary" grid axis over
        # din_p with an f32 VMEM accumulator) instead of keeping w1 fully
        # resident when input_dim is huge (earliest limit hit on v7x).
        raise NotImplementedError(
            f"resident weights ({weight_bytes} B) exceed VMEM budget ({vmem_limit} B); "
            "first-layer K-tiling not implemented")

    TB, n_tiles = _choose_batch_tiling(B, batch_tile)
    while (TB > SUBLANE and
           weight_bytes + _activation_vmem_bytes(TB, din_p, d1_p, d2_p, dh_p, do_p)
           > int(0.85 * vmem_limit)):
        TB = max(SUBLANE, _round_up(TB // 2, SUBLANE))
    n_tiles = max(_cdiv(B, TB), n_tiles)
    Bp = TB * n_tiles
    grid = (n_tiles,)

    # Activation tile: zero-pad batch and feature dims, cast to bf16 for the MXU.
    xp = jnp.pad(x2d, ((0, Bp - B), (0, din_p - x2d.shape[1]))).astype(jnp.bfloat16)

    # Resident (non-tiled) spec: full array block, constant index map, and a
    # single pipeline buffer (a second buffer buys nothing for a constant block).
    def resident(a):
        return pl.BlockSpec(a.shape, lambda i: (0,) * a.ndim,
                            pipeline_mode=pl.Buffered(1))

    flops = 2 * Bp * (din_p * d1_p + d1_p * d2_p + d2_p * dh_p + dh_p * do_p)
    bytes_accessed = (
        xp.size * 2
        + (w1p.size + w2p.size + w3p.size + w4p.size) * 2
        + (b1p.size + b2p.size + b3p.size + b4p.size) * 4
        + Bp * do_p * 4
    )

    out = pl.pallas_call(
        _mlp_kernel,
        out_shape=jax.ShapeDtypeStruct((Bp, do_p), jnp.float32),
        grid=grid,
        in_specs=[
            pl.BlockSpec((TB, din_p), lambda i: (i, 0)),   # activations: batch-tiled
            resident(w1p), resident(b1p),
            resident(w2p), resident(b2p),
            resident(w3p), resident(b3p),
            resident(w4p), resident(b4p),
        ],
        out_specs=pl.BlockSpec((TB, do_p), lambda i: (i, 0)),
        compiler_params=pltpu.CompilerParams(
            dimension_semantics=("parallel",),     # megacore batch sharding on v7x
            vmem_limit_bytes=vmem_limit,           # generation-aware budget
        ),
        cost_estimate=pl.CostEstimate(
            flops=flops, transcendentals=0, bytes_accessed=bytes_accessed),
    )(xp, w1p, b1p, w2p, b2p, w3p, b3p, w4p, b4p)

    # Strip batch / lane padding back to the logical output.
    return out[:B, :dims["do"]]


# -----------------------------------------------------------------------------
# Init + references + self-test
# -----------------------------------------------------------------------------
def init_params(key, input_dim, output_dim, hidden_dim):
    """Deterministic synthetic init. Weights stored as (in, out) = W.T."""
    layer_dims = [(input_dim, 256), (256, 512), (512, hidden_dim),
                  (hidden_dim, output_dim)]
    params = {}
    keys = jax.random.split(key, 2 * len(layer_dims))
    for idx, (d_in, d_out) in enumerate(layer_dims):
        bound = 1.0 / jnp.sqrt(d_in)   # matches torch.nn.Linear default init range
        w = jax.random.uniform(keys[2 * idx], (d_in, d_out), jnp.float32, -bound, bound)
        b = jax.random.uniform(keys[2 * idx + 1], (1, d_out), jnp.float32, -bound, bound)
        params[f"w{idx + 1}"] = w
        params[f"b{idx + 1}"] = b
    return params


def _reference_forward(x, params):
    B = x.shape[0]
    h = x.reshape(B, -1).astype(jnp.float32)
    h = jnp.maximum(h @ params["w1"] + params["b1"], 0.0)
    h = jnp.maximum(h @ params["w2"] + params["b2"], 0.0)
    h = jnp.maximum(h @ params["w3"] + params["b3"], 0.0)
    return h @ params["w4"] + params["b4"]


def _reference_forward_bf16(x, params):
    """Reference with the same bf16-operand / f32-accumulation casting as the kernel."""
    B = x.shape[0]
    h = x.reshape(B, -1).astype(jnp.float32)

    def layer(h, w, b, relu):
        y = jnp.dot(h.astype(jnp.bfloat16), w.astype(jnp.bfloat16),
                    preferred_element_type=jnp.float32) + b.astype(jnp.float32)
        return jnp.maximum(y, 0.0) if relu else y

    h = layer(h, params["w1"], params["b1"], True)
    h = layer(h, params["w2"], params["b2"], True)
    h = layer(h, params["w3"], params["b3"], True)
    return layer(h, params["w4"], params["b4"], False)


if __name__ == "__main__":
    key = jax.random.PRNGKey(0)
    k_x, k_p, k_x2 = jax.random.split(key, 3)

    # Small shapes consistent with the module: input flattened to input_dim=64.
    B, C, H, W = 2, 4, 4, 4
    input_dim = C * H * W      # 64
    hidden_dim = 32
    output_dim = 8

    params = init_params(k_p, input_dim, output_dim, hidden_dim)
    prepared = prepare_params(params)   # pad/cast once, reused by every forward call

    x = jax.random.normal(k_x, (B, C, H, W), jnp.float32)
    out = jax.block_until_ready(neural_network_forward(x, prepared))
    assert out.shape == (B, output_dim)

    ref_f32 = _reference_forward(x, params)
    ref_bf16 = _reference_forward_bf16(x, params)
    assert jnp.allclose(out, ref_bf16, atol=1e-2, rtol=1e-2), (
        f"max abs err vs bf16 ref {jnp.max(jnp.abs(out - ref_bf16))}")
    assert jnp.allclose(out, ref_f32, atol=5e-2, rtol=5e-2), (
        f"max abs err vs f32 ref {jnp.max(jnp.abs(out - ref_f32))}")

    # Larger, non-tile-multiple batch: exercises the multi-tile grid
    # (megacore path on v7x) and batch-padding stripping.
    B2 = 1200
    x2 = jax.random.normal(k_x2, (B2, C, H, W), jnp.float32)
    out2 = jax.block_until_ready(neural_network_forward(x2, prepared))
    assert out2.shape == (B2, output_dim)
    ref2 = _reference_forward(x2, params)
    assert jnp.allclose(out2, ref2, atol=5e-2, rtol=5e-2), (
        f"max abs err vs f32 ref (B={B2}) {jnp.max(jnp.abs(out2 - ref2))}")

    print("KERNEL_OK")
</pallas_src>

<mosaic_0001>
module attributes {stable_mosaic.version = 11 : i64} {
  func.func @_mlp_kernel(%arg0: i32, %arg1: memref<8x128xbf16, #tpu.memory_space<vmem>>, %arg2: memref<128x256xbf16, #tpu.memory_space<vmem>>, %arg3: memref<1x256xf32, #tpu.memory_space<vmem>>, %arg4: memref<256x512xbf16, #tpu.memory_space<vmem>>, %arg5: memref<1x512xf32, #tpu.memory_space<vmem>>, %arg6: memref<512x128xbf16, #tpu.memory_space<vmem>>, %arg7: memref<1x128xf32, #tpu.memory_space<vmem>>, %arg8: memref<128x128xbf16, #tpu.memory_space<vmem>>, %arg9: memref<1x128xf32, #tpu.memory_space<vmem>>, %arg10: memref<8x128xf32, #tpu.memory_space<vmem>>) attributes {dimension_semantics = [#tpu.dimension_semantics<parallel>], iteration_bounds = array<i64: 1>, scalar_prefetch = 0 : i64, scratch_operands = 0 : i64, tpu.core_type = #tpu.core_type<tc>, window_params = [{transform_indices = @transform_0, window_bounds = array<i64: 8, 128>}, {pipeline_mode = #tpu.pipeline_mode<synchronous>, transform_indices = @transform_1, window_bounds = array<i64: 128, 256>}, {pipeline_mode = #tpu.pipeline_mode<synchronous>, transform_indices = @transform_2, window_bounds = array<i64: 1, 256>}, {pipeline_mode = #tpu.pipeline_mode<synchronous>, transform_indices = @transform_3, window_bounds = array<i64: 256, 512>}, {pipeline_mode = #tpu.pipeline_mode<synchronous>, transform_indices = @transform_4, window_bounds = array<i64: 1, 512>}, {pipeline_mode = #tpu.pipeline_mode<synchronous>, transform_indices = @transform_5, window_bounds = array<i64: 512, 128>}, {pipeline_mode = #tpu.pipeline_mode<synchronous>, transform_indices = @transform_6, window_bounds = array<i64: 1, 128>}, {pipeline_mode = #tpu.pipeline_mode<synchronous>, transform_indices = @transform_7, window_bounds = array<i64: 128, 128>}, {pipeline_mode = #tpu.pipeline_mode<synchronous>, transform_indices = @transform_8, window_bounds = array<i64: 1, 128>}, {transform_indices = @transform_9, window_bounds = array<i64: 8, 128>}]} {
    %c0 = arith.constant 0 : index
    %c0_0 = arith.constant 0 : index
    %0 = vector.load %arg1[%c0, %c0_0] : memref<8x128xbf16, #tpu.memory_space<vmem>>, vector<8x128xbf16>
    %c0_1 = arith.constant 0 : index
    %c0_2 = arith.constant 0 : index
    %1 = vector.load %arg3[%c0_1, %c0_2] : memref<1x256xf32, #tpu.memory_space<vmem>>, vector<1x256xf32>
    %c0_3 = arith.constant 0 : index
    %c0_4 = arith.constant 0 : index
    %2 = vector.load %arg5[%c0_3, %c0_4] : memref<1x512xf32, #tpu.memory_space<vmem>>, vector<1x512xf32>
    %c0_5 = arith.constant 0 : index
    %c0_6 = arith.constant 0 : index
    %3 = vector.load %arg7[%c0_5, %c0_6] : memref<1x128xf32, #tpu.memory_space<vmem>>, vector<1x128xf32>
    %c0_7 = arith.constant 0 : index
    %c0_8 = arith.constant 0 : index
    %4 = vector.load %arg9[%c0_7, %c0_8] : memref<1x128xf32, #tpu.memory_space<vmem>>, vector<1x128xf32>
    %c0_9 = arith.constant 0 : index
    %c0_10 = arith.constant 0 : index
    %5 = vector.load %arg2[%c0_9, %c0_10] : memref<128x256xbf16, #tpu.memory_space<vmem>>, vector<128x256xbf16>
    %cst = arith.constant dense<0.000000e+00> : vector<8x256xf32>
    %6 = tpu.matmul %0, %5, %cst {dimension_numbers = #tpu.dot_dimension_numbers<[1], [0], [0], [1], [0, 0, 1, 1], [], []>} : vector<8x128xbf16>, vector<128x256xbf16>, vector<8x256xf32> -> vector<8x256xf32>
    %7 = vector.broadcast %1 : vector<1x256xf32> to vector<8x256xf32>
    %8 = arith.addf %6, %7 : vector<8x256xf32>
    %cst_11 = arith.constant 0.000000e+00 : f32
    %9 = vector.broadcast %cst_11 : f32 to vector<8x256xf32>
    %10 = arith.maximumf %8, %9 : vector<8x256xf32>
    %11 = arith.truncf %10 : vector<8x256xf32> to vector<8x256xbf16>
    %c0_12 = arith.constant 0 : index
    %c0_13 = arith.constant 0 : index
    %12 = vector.load %arg4[%c0_12, %c0_13] : memref<256x512xbf16, #tpu.memory_space<vmem>>, vector<256x512xbf16>
    %cst_14 = arith.constant dense<0.000000e+00> : vector<8x512xf32>
    %13 = tpu.matmul %11, %12, %cst_14 {dimension_numbers = #tpu.dot_dimension_numbers<[1], [0], [0], [1], [0, 0, 1, 1], [], []>} : vector<8x256xbf16>, vector<256x512xbf16>, vector<8x512xf32> -> vector<8x512xf32>
    %14 = vector.broadcast %2 : vector<1x512xf32> to vector<8x512xf32>
    %15 = arith.addf %13, %14 : vector<8x512xf32>
    %cst_15 = arith.constant 0.000000e+00 : f32
    %16 = vector.broadcast %cst_15 : f32 to vector<8x512xf32>
    %17 = arith.maximumf %15, %16 : vector<8x512xf32>
    %18 = arith.truncf %17 : vector<8x512xf32> to vector<8x512xbf16>
    %c0_16 = arith.constant 0 : index
    %c0_17 = arith.constant 0 : index
    %19 = vector.load %arg6[%c0_16, %c0_17] : memref<512x128xbf16, #tpu.memory_space<vmem>>, vector<512x128xbf16>
    %cst_18 = arith.constant dense<0.000000e+00> : vector<8x128xf32>
    %20 = tpu.matmul %18, %19, %cst_18 {dimension_numbers = #tpu.dot_dimension_numbers<[1], [0], [0], [1], [0, 0, 1, 1], [], []>} : vector<8x512xbf16>, vector<512x128xbf16>, vector<8x128xf32> -> vector<8x128xf32>
    %21 = vector.broadcast %3 : vector<1x128xf32> to vector<8x128xf32>
    %22 = arith.addf %20, %21 : vector<8x128xf32>
    %cst_19 = arith.constant 0.000000e+00 : f32
    %23 = vector.broadcast %cst_19 : f32 to vector<8x128xf32>
    %24 = arith.maximumf %22, %23 : vector<8x128xf32>
    %25 = arith.truncf %24 : vector<8x128xf32> to vector<8x128xbf16>
    %c0_20 = arith.constant 0 : index
    %c0_21 = arith.constant 0 : index
    %26 = vector.load %arg8[%c0_20, %c0_21] : memref<128x128xbf16, #tpu.memory_space<vmem>>, vector<128x128xbf16>
    %cst_22 = arith.constant dense<0.000000e+00> : vector<8x128xf32>
    %27 = tpu.matmul %25, %26, %cst_22 {dimension_numbers = #tpu.dot_dimension_numbers<[1], [0], [0], [1], [0, 0, 1, 1], [], []>} : vector<8x128xbf16>, vector<128x128xbf16>, vector<8x128xf32> -> vector<8x128xf32>
    %28 = vector.broadcast %4 : vector<1x128xf32> to vector<8x128xf32>
    %29 = arith.addf %27, %28 : vector<8x128xf32>
    %c0_23 = arith.constant 0 : index
    %c0_24 = arith.constant 0 : index
    %30 = vector.load %arg10[%c0_23, %c0_24] : memref<8x128xf32, #tpu.memory_space<vmem>>, vector<8x128xf32>
    tpu.vector_store %arg10[%c0_23, %c0_24], %29 {strides = array<i32>} : memref<8x128xf32, #tpu.memory_space<vmem>>, vector<8x128xf32>,
    return
  }
  func.func @transform_0(%arg0: i32) -> (i32, i32) {
    %c0_i32 = arith.constant 0 : i32
    %c0_i32_0 = arith.constant 0 : i32
    return %arg0, %c0_i32 : i32, i32
  }
  func.func @transform_1(%arg0: i32) -> (i32, i32) {
    %c0_i32 = arith.constant 0 : i32
    %c0_i32_0 = arith.constant 0 : i32
    %c0_i32_1 = arith.constant 0 : i32
    return %c0_i32, %c0_i32_0 : i32, i32
  }
  func.func @transform_2(%arg0: i32) -> (i32, i32) {
    %c0_i32 = arith.constant 0 : i32
    %c0_i32_0 = arith.constant 0 : i32
    %c0_i32_1 = arith.constant 0 : i32
    return %c0_i32, %c0_i32_0 : i32, i32
  }
  func.func @transform_3(%arg0: i32) -> (i32, i32) {
    %c0_i32 = arith.constant 0 : i32
    %c0_i32_0 = arith.constant 0 : i32
    %c0_i32_1 = arith.constant 0 : i32
    return %c0_i32, %c0_i32_0 : i32, i32
  }
  func.func @transform_4(%arg0: i32) -> (i32, i32) {
    %c0_i32 = arith.constant 0 : i32
    %c0_i32_0 = arith.constant 0 : i32
    %c0_i32_1 = arith.constant 0 : i32
    return %c0_i32, %c0_i32_0 : i32, i32
  }
  func.func @transform_5(%arg0: i32) -> (i32, i32) {
    %c0_i32 = arith.constant 0 : i32
    %c0_i32_0 = arith.constant 0 : i32
    %c0_i32_1 = arith.constant 0 : i32
    return %c0_i32, %c0_i32_0 : i32, i32
  }
  func.func @transform_6(%arg0: i32) -> (i32, i32) {
    %c0_i32 = arith.constant 0 : i32
    %c0_i32_0 = arith.constant 0 : i32
    %c0_i32_1 = arith.constant 0 : i32
    return %c0_i32, %c0_i32_0 : i32, i32
  }
  func.func @transform_7(%arg0: i32) -> (i32, i32) {
    %c0_i32 = arith.constant 0 : i32
    %c0_i32_0 = arith.constant 0 : i32
    %c0_i32_1 = arith.constant 0 : i32
    return %c0_i32, %c0_i32_0 : i32, i32
  }
  func.func @transform_8(%arg0: i32) -> (i32, i32) {
    %c0_i32 = arith.constant 0 : i32
    %c0_i32_0 = arith.constant 0 : i32
    %c0_i32_1 = arith.constant 0 : i32
    return %c0_i32, %c0_i32_0 : i32, i32
  }
  func.func @transform_9(%arg0: i32) -> (i32, i32) {
    %c0_i32 = arith.constant 0 : i32
    %c0_i32_0 = arith.constant 0 : i32
    return %arg0, %c0_i32 : i32, i32
  }
}

</mosaic_0001>

<bundles_post_ra>
// kernel: tpu_custom_call.1
= control target key start
LH: loop header
LB: loop body
LE: loop exit
PB: predicated region body
PF: predicated region fallthrough
CT: control target
= control target key end

     0   :  { %14 = vsyncpa [#allocation3], 0  ;;  %s2103_s0 = inlined_call_operand.hbm [shape: bf16[8,128], index: 0, kind: input, shape index: {}]   ;;  %s2104_s1 = inlined_call_operand.hbm [shape: bf16[128,256], index: 1, kind: input, shape index: {}]   ;;  %s2105_s2 = inlined_call_operand.hbm [shape: f32[1,256], index: 2, kind: input, shape index: {}]   ;;  %s2106_s3 = inlined_call_operand.hbm [shape: bf16[256,512], index: 3, kind: input, shape index: {}]   ;;  %s2107_s4 = inlined_call_operand.hbm [shape: f32[1,512], index: 4, kind: input, shape index: {}]   ;;  %s2108_s5 = inlined_call_operand.hbm [shape: bf16[512,128], index: 5, kind: input, shape index: {}]   ;;  %s2109_s6 = inlined_call_operand.vmem [shape: f32[1,128], index: 6, kind: input, shape index: {}]   ;;  %s2110_s7 = inlined_call_operand.hbm [shape: bf16[128,128], index: 7, kind: input, shape index: {}]   ;;  %s2111_s8 = inlined_call_operand.vmem [shape: f32[1,128], index: 8, kind: input, shape index: {}]   ;;  %s2112_s9 = inlined_call_operand.hbm [shape: f32[8,128], index: 9, kind: output, shape index: {}]  }
   0x1   :  { %15 = vsyncpa [#allocation6], 0 }
   0x2   :  { %16 = vsyncpa [#allocation9], 0 }
   0x3   :  { %17 = vsyncpa [#allocation12], 0  ;;  %s34_s11 = sshll.u32 %s2104_s1, 4  ;;  %s35_s11 = int_to_ptr.hbm [resolvable:$true] %s34_s11 }
   0x4   :  { %18 = vsyncpa [#allocation4], 0  ;;  %s2009_s12 = smov [#allocation5]   ;;  %s58_s16 = sshll.u32 %s2106_s3, 4  ;;  %s59_s16 = int_to_ptr.hbm [resolvable:$true] %s58_s16 }
   0x5   :  { %s36_s13 = sshll.u32 %s2009_s12, 4  ;;  %s2010_s17 = smov 128   ;;  %s37_s13 = int_to_ptr.vmem [resolvable:$true] %s36_s13 }
   0x6   :  { %s2011_s18 = smov 8   ;;  %s2012_s19 = smov [#allocation8]  }
   0x7   :  { %42 = dma.hbm_to_vmem [thread:$0]  %s35_s11, 2048, %s37_s13, [#allocation6], %s2010_s17, %s2010_s17, %s2011_s18  }
   0x8   :  { %s60_s20 = sshll.u32 %s2012_s19, 4  ;;  %s2013_s21 = smov 256   ;;  %s61_s20 = int_to_ptr.vmem [resolvable:$true] %s60_s20 }
   0x9   :  { %s2014_s22 = smov 16   ;;  %s82_s24 = sshll.u32 %s2108_s5, 4  ;;  %s83_s24 = int_to_ptr.hbm [resolvable:$true] %s82_s24 }
   0xa   :  { %66 = dma.hbm_to_vmem [thread:$0]  %s59_s16, 8192, %s61_s20, [#allocation9], %s2013_s21, %s2013_s21, %s2014_s22  }
   0xb   :  { %s2015_s25 = smov [#allocation11]   ;;  %s24_s28 = sshll.u32 %s2103_s0, 4  ;;  %s25_s28 = int_to_ptr.hbm [resolvable:$true] %s24_s28 }
   0xc   :  { %s84_s26 = sshll.u32 %s2015_s25, 4  ;;  %s2016_s29 = smov 64   ;;  %s85_s26 = int_to_ptr.vmem [resolvable:$true] %s84_s26 }
   0xd   :  { %s2017_s30 = smov 4   ;;  %s2018_s10 = smov [#allocation2]  }
   0xe   :  { %90 = dma.hbm_to_vmem [thread:$0]  %s83_s24, 4096, %s85_s26, [#allocation12], %s2016_s29, %s2016_s29, %s2017_s30  }
   0xf   :  { %s26_s11 = sshll.u32 %s2018_s10, 4  ;;  %s48_s14 = sshll.u32 %s2105_s2, 4  ;;  %s27_s11 = int_to_ptr.vmem [resolvable:$true] %s26_s11  ;;  %s49_s14 = int_to_ptr.hbm [resolvable:$true] %s48_s14 }
  0x10   :  { %29 = dma.hbm_to_vmem [thread:$0]  %s25_s28, 64, %s27_s11, [#allocation3]  }
  0x11   :  { %s72_s16 = sshll.u32 %s2107_s4, 4  ;;  %s2019_s17 = smov [#allocation7]   ;;  %s73_s16 = int_to_ptr.hbm [resolvable:$true] %s72_s16 }
  0x12   :  { %s50_s18 = sshll.u32 %s2019_s17, 4  ;;  %s2020_s0 = smov [#allocation10]   ;;  %s51_s18 = int_to_ptr.vmem [resolvable:$true] %s50_s18 }
  0x13   :  { %53 = dma.hbm_to_vmem [thread:$0]  %s49_s14, 32, %s51_s18, [#allocation6]  }
  0x14   :  { %s74_s19 = sshll.u32 %s2020_s0, 4  ;;  %s97_s22 = sshll.u32 %s2110_s7, 4  ;;  %s75_s19 = int_to_ptr.vmem [resolvable:$true] %s74_s19  ;;  %s98_s22 = int_to_ptr.hbm [resolvable:$true] %s97_s22 }
  0x15   :  { %77 = dma.hbm_to_vmem [thread:$0]  %s73_s16, 64, %s75_s19, [#allocation9]  }
  0x16   :  { %s2021_s2 = smov [#allocation13]  }
  0x17   :  { %s99_s1 = sshll.u32 %s2021_s2, 4  ;;  %s100_s1 = int_to_ptr.vmem [resolvable:$true] %s99_s1 }
  0x18   :  { %105 = dma.hbm_to_vmem [thread:$0]  %s98_s22, 1024, %s100_s1, [#allocation12], %s2016_s29, %s2016_s29, %s2017_s30  }
  0x19   :  { %1999 = dma.done.wait [#allocation3], 64  }
  0x1a   :  { %2000 = vsyncadd [#allocation3], 4294967232 }
  0x1b   :  { %2001 = dma.done.wait [#allocation6], 2080  }
  0x1c   :  { %2002 = vsyncadd [#allocation6], 4294965216 }
  0x1d   :  { %2003 = dma.done.wait [#allocation9], 8256  }
  0x1e   :  { %2004 = vsyncadd [#allocation9], 4294959040 }
  0x1f   :  { %2005 = dma.done.wait [#allocation12], 5120  }
  0x20   :  { %2006 = vsyncadd [#allocation12], 4294962176  ;;  %v1249_v0 = vld [vmem:[#allocation5 + $0x70] sm:$0xf]  ;;  %v1686_v1 = vld [vmem:[#allocation5 + $0x74] sm:$0xf0] }
  0x21   :  { %v1685_v2 = vld [vmem:[#allocation5 + $0x74] sm:$0xf]  ;;  %v1250_v3 = vor.u32 %v1686_v1, %v1249_v0  ;;  %v1251_v4 = vld [vmem:[#allocation5 + $0x78] sm:$0xf0]  ;;  %v1241_v5 = vld [vmem:[#allocation5 + $0x60] sm:$0xf] }
  0x22   :  { %v1684_v6 = vld [vmem:[#allocation5 + $0x64] sm:$0xf0]  ;;  %v1254_v7 = vor.u32 %v1685_v2, %v1251_v4  ;;  %v1683_v8 = vld [vmem:[#allocation5 + $0x64] sm:$0xf]  ;;  %v1243_v9 = vld [vmem:[#allocation5 + $0x68] sm:$0xf0] }
  0x23   :  { %242 = vmatpush.bf16.msra.mxu0 %v1250_v3  ;;  %v1242_v10 = vor.u32 %v1684_v6, %v1241_v5  ;;  %v1246_v11 = vor.u32 %v1683_v8, %v1243_v9  ;;  %v1233_v12 = vld [vmem:[#allocation5 + $0x50] sm:$0xf]  ;;  %v1682_v13 = vld [vmem:[#allocation5 + $0x54] sm:$0xf0]  ;;  %v1681_v14 = vld [vmem:[#allocation5 + $0x54] sm:$0xf] }
  0x24   :  { %255 = vmatpush.bf16.msra.mxu1 %v1254_v7  ;;  %v1235_v15 = vld [vmem:[#allocation5 + $0x58] sm:$0xf0]  ;;  %v1234_v16 = vor.u32 %v1682_v13, %v1233_v12  ;;  %v1225_v18 = vld [vmem:[#allocation5 + $0x40] sm:$0xf]  ;;  %v1680_v19 = vld [vmem:[#allocation5 + $0x44] sm:$0xf0] }
  0x25   :  { %v1238_v17 = vor.u32 %v1681_v14, %v1235_v15  ;;  %v1679_v20 = vld [vmem:[#allocation5 + $0x44] sm:$0xf]  ;;  %v1227_v21 = vld [vmem:[#allocation5 + $0x48] sm:$0xf0]  ;;  %v1226_v22 = vor.u32 %v1680_v19, %v1225_v18  ;;  %v1717_v24 = vld [vmem:[#allocation8 + $0xec] sm:$0xf0] }
  0x26   :  { %v1369_v23 = vld [vmem:[#allocation8 + $0xe0] sm:$0xf]  ;;  %v1230_v26 = vor.u32 %v1679_v20, %v1227_v21  ;;  %v1217_v27 = vld [vmem:[#allocation5 + $0x30] sm:$0xf]  ;;  %v1678_v28 = vld [vmem:[#allocation5 + $0x34] sm:$0xf0] }
  0x27   :  { %243 = vmatpush.bf16.msra.mxu0 %v1242_v10  ;;  %v1497_v25 = vld [vmem:[#allocation8 + $0x1e0] sm:$0xf]  ;;  %v1370_v29 = vor.u32 %v1717_v24, %v1369_v23  ;;  %v1749_v30 = vld [vmem:[#allocation8 + $0x1ec] sm:$0xf0]  ;;  %v1219_v32 = vld [vmem:[#allocation5 + $0x38] sm:$0xf0]  ;;  %v1218_v38 = vor.u32 %v1678_v28, %v1217_v27 }
  0x28   :  { %256 = vmatpush.bf16.msra.mxu1 %v1246_v11  ;;  %v1677_v31 = vld [vmem:[#allocation5 + $0x34] sm:$0xf]  ;;  %v1498_v33 = vor.u32 %v1749_v30, %v1497_v25  ;;  %v1353_v34 = vld [vmem:[#allocation8 + $0xc0] sm:$0xf]  ;;  %v1676_v40 = vld [vmem:[#allocation5 + $0x24] sm:$0xf0] }
  0x29   :  { %665 = vmatpush.bf16.msra.mxu2 %v1370_v29  ;;  %v1713_v35 = vld [vmem:[#allocation8 + $0xcc] sm:$0xf0]  ;;  %v1481_v36 = vld [vmem:[#allocation8 + $0x1c0] sm:$0xf]  ;;  %v1222_v43 = vor.u32 %v1677_v31, %v1219_v32  ;;  %v1211_v47 = vld [vmem:[#allocation5 + $0x28] sm:$0xf0] }
  0x2a   :  { %v1745_v37 = vld [vmem:[#allocation8 + $0x1cc] sm:$0xf0]  ;;  %v1209_v39 = vld [vmem:[#allocation5 + $0x20] sm:$0xf]  ;;  %678 = vmatpush.bf16.msra.mxu3 %v1498_v33  ;;  %v1354_v41 = vor.u32 %v1713_v35, %v1353_v34  ;;  %v1675_v44 = vld [vmem:[#allocation5 + $0x24] sm:$0xf] }
  0x2b   :  { %244 = vmatpush.bf16.msra.mxu0 %v1234_v16  ;;  %v1482_v42 = vor.u32 %v1745_v37, %v1481_v36  ;;  %v1337_v45 = vld [vmem:[#allocation8 + $0xa0] sm:$0xf]  ;;  %v1709_v46 = vld [vmem:[#allocation8 + $0xac] sm:$0xf0]  ;;  %v1210_v51 = vor.u32 %v1676_v40, %v1209_v39  ;;  %v1214_v56 = vor.u32 %v1675_v44, %v1211_v47  ;;  %v1674_v57 = vld [vmem:[#allocation5 + $0x14] sm:$0xf0] }
  0x2c   :  { %257 = vmatpush.bf16.msra.mxu1 %v1238_v17  ;;  %v1465_v48 = vld [vmem:[#allocation8 + $0x1a0] sm:$0xf]  ;;  %v1741_v49 = vld [vmem:[#allocation8 + $0x1ac] sm:$0xf0]  ;;  %v1338_v50 = vor.u32 %v1709_v46, %v1337_v45  ;;  %v1203_v61 = vld [vmem:[#allocation5 + $0x18] sm:$0xf0] }
  0x2d   :  { %666 = vmatpush.bf16.msra.mxu2 %v1354_v41  ;;  %v1201_v52 = vld [vmem:[#allocation5 + $0x10] sm:$0xf]  ;;  %v1466_v53 = vor.u32 %v1741_v49, %v1465_v48  ;;  %v1321_v54 = vld [vmem:[#allocation8 + $0x80] sm:$0xf]  ;;  %v1673_v60 = vld [vmem:[#allocation5 + $0x14] sm:$0xf] }
  0x2e   :  { %679 = vmatpush.bf16.msra.mxu3 %v1482_v42  ;;  %v1705_v55 = vld [vmem:[#allocation8 + $0x8c] sm:$0xf0]  ;;  %v1449_v58 = vld [vmem:[#allocation8 + $0x180] sm:$0xf]  ;;  %v1202_v0 = vor.u32 %v1674_v57, %v1201_v52  ;;  %v1672_v1 = vld [vmem:[#allocation5 + $0x4] sm:$0xf0]  ;;  %v1206_v5 = vor.u32 %v1673_v60, %v1203_v61 }
  0x2f   :  { %245 = vmatpush.bf16.msra.mxu0 %v1226_v22  ;;  %v1737_v59 = vld [vmem:[#allocation8 + $0x18c] sm:$0xf0]  ;;  %v1193_v62 = vld [vmem:[#allocation5] sm:$0xf]  ;;  %v1322_v63 = vor.u32 %v1705_v55, %v1321_v54  ;;  %v1671_v6 = vld [vmem:[#allocation5 + $0x4] sm:$0xf] }
  0x30   :  { %258 = vmatpush.bf16.msra.mxu1 %v1230_v26  ;;  %v1450_v2 = vor.u32 %v1737_v59, %v1449_v58  ;;  %v1305_v3 = vld [vmem:[#allocation8 + $0x60] sm:$0xf]  ;;  %v1701_v4 = vld [vmem:[#allocation8 + $0x6c] sm:$0xf0]  ;;  %v1195_v9 = vld [vmem:[#allocation5 + $0x8] sm:$0xf0]  ;;  %v1194_v15 = vor.u32 %v1672_v1, %v1193_v62 }
  0x31   :  { %667 = vmatpush.bf16.msra.mxu2 %v1338_v50  ;;  %v1433_v7 = vld [vmem:[#allocation8 + $0x160] sm:$0xf]  ;;  %v1733_v8 = vld [vmem:[#allocation8 + $0x16c] sm:$0xf0]  ;;  %v1715_v10 = vld [vmem:[#allocation8 + $0xe4] sm:$0xf]  ;;  %v1306_v14 = vor.u32 %v1701_v4, %v1305_v3  ;;  %v1198_v19 = vor.u32 %v1671_v6, %v1195_v9 }
  0x32   :  { %680 = vmatpush.bf16.msra.mxu3 %v1466_v53  ;;  %v1371_v11 = vld [vmem:[#allocation8 + $0xf0] sm:$0xf0]  ;;  %v1747_v12 = vld [vmem:[#allocation8 + $0x1e4] sm:$0xf]  ;;  %v1434_v16 = vor.u32 %v1733_v8, %v1433_v7  ;;  %v1289_v17 = vld [vmem:[#allocation8 + $0x40] sm:$0xf] }
  0x33   :  { %246 = vmatpush.bf16.msra.mxu0 %v1218_v38  ;;  %v1499_v13 = vld [vmem:[#allocation8 + $0x1f0] sm:$0xf0]  ;;  %v1697_v18 = vld [vmem:[#allocation8 + $0x4c] sm:$0xf0]  ;;  %v1374_v20 = vor.u32 %v1715_v10, %v1371_v11  ;;  %v1417_v21 = vld [vmem:[#allocation8 + $0x140] sm:$0xf] }
  0x34   :  { %259 = vmatpush.bf16.msra.mxu1 %v1222_v43  ;;  %v1729_v22 = vld [vmem:[#allocation8 + $0x14c] sm:$0xf0]  ;;  %v1502_v23 = vor.u32 %v1747_v12, %v1499_v13  ;;  %v1711_v24 = vld [vmem:[#allocation8 + $0xc4] sm:$0xf]  ;;  %v1355_v25 = vld [vmem:[#allocation8 + $0xd0] sm:$0xf0]  ;;  %v1290_v28 = vor.u32 %v1697_v18, %v1289_v17 }
  0x35   :  { %668 = vmatpush.bf16.msra.mxu2 %v1322_v63  ;;  %v1743_v26 = vld [vmem:[#allocation8 + $0x1c4] sm:$0xf]  ;;  %v1483_v27 = vld [vmem:[#allocation8 + $0x1d0] sm:$0xf0]  ;;  %v136_v29 = vld [vmem:[#allocation2] sm:$0xf]  ;;  %v1418_v30 = vor.u32 %v1729_v22, %v1417_v21  ;;  %v1358_v33 = vor.u32 %v1711_v24, %v1355_v25 }
  0x36   :  { %681 = vmatpush.bf16.msra.mxu3 %v1450_v2  ;;  %v1273_v31 = vld [vmem:[#allocation8 + $0x20] sm:$0xf]  ;;  %v1693_v32 = vld [vmem:[#allocation8 + $0x2c] sm:$0xf0]  ;;  %v1486_v36 = vor.u32 %v1743_v26, %v1483_v27  ;;  %v1707_v37 = vld [vmem:[#allocation8 + $0xa4] sm:$0xf] }
  0x37   :  { %247 = vmatpush.bf16.msra.mxu0 %v1210_v51  ;;  %v1401_v34 = vld [vmem:[#allocation8 + $0x120] sm:$0xf]  ;;  %v1725_v35 = vld [vmem:[#allocation8 + $0x12c] sm:$0xf0]  ;;  %v1339_v38 = vld [vmem:[#allocation8 + $0xb0] sm:$0xf0]  ;;  %v1274_v41 = vor.u32 %v1693_v32, %v1273_v31 }
  0x38   :  { %260 = vmatpush.bf16.msra.mxu1 %v1214_v56  ;;  %v1739_v39 = vld [vmem:[#allocation8 + $0x1a4] sm:$0xf]  ;;  %v1467_v40 = vld [vmem:[#allocation8 + $0x1b0] sm:$0xf0]  ;;  %v1402_v44 = vor.u32 %v1725_v35, %v1401_v34  ;;  %v1257_v45 = vld [vmem:[#allocation8] sm:$0xf]  ;;  %v1342_v48 = vor.u32 %v1707_v37, %v1339_v38 }
  0x39   :  { %669 = vmatpush.bf16.msra.mxu2 %v1306_v14  ;;  %v1703_v42 = vld [vmem:[#allocation8 + $0x84] sm:$0xf]  ;;  %v1323_v43 = vld [vmem:[#allocation8 + $0x90] sm:$0xf0]  ;;  %v1689_v46 = vld [vmem:[#allocation8 + $0xc] sm:$0xf0]  ;;  %v1470_v52 = vor.u32 %v1739_v39, %v1467_v40 }
  0x3a   :  { %682 = vmatpush.bf16.msra.mxu3 %v1434_v16  ;;  %v1385_v47 = vld [vmem:[#allocation8 + $0x100] sm:$0xf]  ;;  %v1721_v49 = vld [vmem:[#allocation8 + $0x10c] sm:$0xf0]  ;;  %v1377_v50 = vld [vmem:[#allocation8 + $0xe8] sm:$0xf]  ;;  %v1258_v57 = vor.u32 %v1689_v46, %v1257_v45  ;;  %v1326_v60 = vor.u32 %v1703_v42, %v1323_v43 }
  0x3b   :  { %248 = vmatpush.bf16.msra.mxu0 %v1202_v0  ;;  %v1718_v51 = vld [vmem:[#allocation8 + $0xf4] sm:$0xf0]  ;;  %v1735_v53 = vld [vmem:[#allocation8 + $0x184] sm:$0xf]  ;;  %v1505_v54 = vld [vmem:[#allocation8 + $0x1e8] sm:$0xf]  ;;  %v1386_v58 = vor.u32 %v1721_v49, %v1385_v47 }
  0x3c   :  { %261 = vmatpush.bf16.msra.mxu1 %v1206_v5  ;;  %v1750_v55 = vld [vmem:[#allocation8 + $0x1f4] sm:$0xf0]  ;;  %v1451_v56 = vld [vmem:[#allocation8 + $0x190] sm:$0xf0]  ;;  %v1378_v59 = vor.u32 %v1718_v51, %v1377_v50  ;;  %v1699_v61 = vld [vmem:[#allocation8 + $0x64] sm:$0xf] }
  0x3d   :  { %670 = vmatpush.bf16.msra.mxu2 %v1290_v28  ;;  %v1506_v62 = vor.u32 %v1750_v55, %v1505_v54  ;;  %v1361_v63 = vld [vmem:[#allocation8 + $0xc8] sm:$0xf]  ;;  %v1714_v0 = vld [vmem:[#allocation8 + $0xd4] sm:$0xf0]  ;;  %v1454_v1 = vor.u32 %v1735_v53, %v1451_v56  ;;  %v1307_v2 = vld [vmem:[#allocation8 + $0x70] sm:$0xf0] }
  0x3e   :  { %683 = vmatpush.bf16.msra.mxu3 %v1418_v30  ;;  %v1489_v3 = vld [vmem:[#allocation8 + $0x1c8] sm:$0xf]  ;;  %v1746_v4 = vld [vmem:[#allocation8 + $0x1d4] sm:$0xf0]  ;;  %v1731_v5 = vld [vmem:[#allocation8 + $0x164] sm:$0xf]  ;;  %v1362_v7 = vor.u32 %v1714_v0, %v1361_v63  ;;  %v1310_v8 = vor.u32 %v1699_v61, %v1307_v2 }
  0x3f   :  { %249 = vmatpush.bf16.msra.mxu0 %v1194_v15  ;;  %v1435_v6 = vld [vmem:[#allocation8 + $0x170] sm:$0xf0]  ;;  %v1490_v9 = vor.u32 %v1746_v4, %v1489_v3  ;;  %v1695_v11 = vld [vmem:[#allocation8 + $0x44] sm:$0xf]  ;;  %v1716_v27 = vld [vmem:[#allocation8 + $0xec] sm:$0xf] }
  0x40   :  { %262 = vmatpush.bf16.msra.mxu1 %v1198_v19  ;;  %v1438_v10 = vor.u32 %v1731_v5, %v1435_v6  ;;  %v1291_v12 = vld [vmem:[#allocation8 + $0x50] sm:$0xf0]  ;;  %v1727_v13 = vld [vmem:[#allocation8 + $0x144] sm:$0xf]  ;;  %v1379_v28 = vld [vmem:[#allocation8 + $0xf8] sm:$0xf0] }
  0x41   :  { %671 = vmatpush.bf16.msra.mxu2 %v1274_v41  ;;  %v1419_v14 = vld [vmem:[#allocation8 + $0x150] sm:$0xf0]  ;;  %v1294_v15 = vor.u32 %v1695_v11, %v1291_v12  ;;  %v1691_v17 = vld [vmem:[#allocation8 + $0x24] sm:$0xf]  ;;  %v1507_v30 = vld [vmem:[#allocation8 + $0x1f8] sm:$0xf0] }
  0x42   :  { %250 = vmatmul.bf16.vlgmr.msra.gmra.mxu0 %v136_v29  ;;  %684 = vmatpush.bf16.msra.mxu3 %v1402_v44  ;;  %v1422_v16 = vor.u32 %v1727_v13, %v1419_v14  ;;  %v1275_v18 = vld [vmem:[#allocation8 + $0x30] sm:$0xf0]  ;;  %v1723_v19 = vld [vmem:[#allocation8 + $0x124] sm:$0xf]  ;;  %v1712_v35 = vld [vmem:[#allocation8 + $0xcc] sm:$0xf] }
  0x43   :  { %691 = vmatpush.bf16.msrb.mxu0 %v1374_v20  ;;  %263 = vmatmul.bf16.vlgmr.msra.gmra.mxu1 %v136_v29  ;;  %v1403_v20 = vld [vmem:[#allocation8 + $0x130] sm:$0xf0]  ;;  %v1278_v21 = vor.u32 %v1691_v17, %v1275_v18  ;;  %v1719_v25 = vld [vmem:[#allocation8 + $0x104] sm:$0xf]  ;;  %v1748_v29 = vld [vmem:[#allocation8 + $0x1ec] sm:$0xf] }
  0x44   :  { %704 = vmatpush.bf16.msrb.mxu1 %v1502_v23  ;;  %v1406_v22 = vor.u32 %v1723_v19, %v1403_v20  ;;  %v1687_v23 = vld [vmem:[#allocation8 + $0x4] sm:$0xf]  ;;  %v1259_v24 = vld [vmem:[#allocation8 + $0x10] sm:$0xf0]  ;;  %v1510_v34 = vor.u32 %v1748_v29, %v1507_v30  ;;  %v1744_v37 = vld [vmem:[#allocation8 + $0x1cc] sm:$0xf] }
  0x45   :  { %672 = vmatpush.bf16.msra.mxu2 %v1258_v57  ;;  %v1387_v26 = vld [vmem:[#allocation8 + $0x110] sm:$0xf0]  ;;  %v1262_v31 = vor.u32 %v1687_v23, %v1259_v24  ;;  %v1491_v38 = vld [vmem:[#allocation8 + $0x1d8] sm:$0xf0]  ;;  %v1345_v41 = vld [vmem:[#allocation8 + $0xa8] sm:$0xf] }
  0x46   :  { %685 = vmatpush.bf16.msra.mxu3 %v1386_v58  ;;  %v1390_v32 = vor.u32 %v1719_v25, %v1387_v26  ;;  %v1494_v40 = vor.u32 %v1744_v37, %v1491_v38  ;;  %v1710_v42 = vld [vmem:[#allocation8 + $0xb4] sm:$0xf0]  ;;  %v1473_v43 = vld [vmem:[#allocation8 + $0x1a8] sm:$0xf]  ;;  %v1708_v46 = vld [vmem:[#allocation8 + $0xac] sm:$0xf] }
  0x47   :  { %692 = vmatpush.bf16.msrb.mxu0 %v1358_v33  ;;  %v1382_v33 = vor.u32 %v1716_v27, %v1379_v28  ;;  %v1346_v44 = vor.u32 %v1710_v42, %v1345_v41  ;;  %v1742_v45 = vld [vmem:[#allocation8 + $0x1b4] sm:$0xf0]  ;;  %v1347_v47 = vld [vmem:[#allocation8 + $0xb8] sm:$0xf0]  ;;  %v1740_v50 = vld [vmem:[#allocation8 + $0x1ac] sm:$0xf] }
  0x48   :  { %705 = vmatpush.bf16.msrb.mxu1 %v1486_v36  ;;  %v1363_v36 = vld [vmem:[#allocation8 + $0xd8] sm:$0xf0]  ;;  %v1350_v49 = vor.u32 %v1708_v46, %v1347_v47  ;;  %v1329_v53 = vld [vmem:[#allocation8 + $0x88] sm:$0xf]  ;;  %v1706_v54 = vld [vmem:[#allocation8 + $0x94] sm:$0xf0] }
  0x49   :  { %717 = vmatpush.bf16.msrb.mxu2 %v1378_v59  ;;  %v1366_v39 = vor.u32 %v1712_v35, %v1363_v36  ;;  %v1475_v51 = vld [vmem:[#allocation8 + $0x1b8] sm:$0xf0]  ;;  %v1457_v55 = vld [vmem:[#allocation8 + $0x188] sm:$0xf]  ;;  %v1330_v56 = vor.u32 %v1706_v54, %v1329_v53  ;;  %v1738_v57 = vld [vmem:[#allocation8 + $0x194] sm:$0xf0] }
  0x4a   :  { %730 = vmatpush.bf16.msrb.mxu3 %v1506_v62  ;;  %v1704_v58 = vld [vmem:[#allocation8 + $0x8c] sm:$0xf]  ;;  %v1331_v59 = vld [vmem:[#allocation8 + $0x98] sm:$0xf0]  ;;  %v1702_v2 = vld [vmem:[#allocation8 + $0x74] sm:$0xf0] }
  0x4b   :  { %693 = vmatpush.bf16.msrb.mxu0 %v1342_v48  ;;  %v1474_v48 = vor.u32 %v1742_v45, %v1473_v43  ;;  %v1334_v61 = vor.u32 %v1704_v58, %v1331_v59  ;;  %v1736_v62 = vld [vmem:[#allocation8 + $0x18c] sm:$0xf]  ;;  %v1459_v63 = vld [vmem:[#allocation8 + $0x198] sm:$0xf0]  ;;  %v1441_v3 = vld [vmem:[#allocation8 + $0x168] sm:$0xf] }
  0x4c   :  { %706 = vmatpush.bf16.msrb.mxu1 %v1470_v52  ;;  %v1478_v52 = vor.u32 %v1740_v50, %v1475_v51  ;;  %v1462_v0 = vor.u32 %v1736_v62, %v1459_v63  ;;  %v1734_v5 = vld [vmem:[#allocation8 + $0x174] sm:$0xf0]  ;;  %v1700_v6 = vld [vmem:[#allocation8 + $0x6c] sm:$0xf]  ;;  %v1443_v11 = vld [vmem:[#allocation8 + $0x178] sm:$0xf0] }
  0x4d   :  { %718 = vmatpush.bf16.msrb.mxu2 %v1362_v7  ;;  %v1315_v7 = vld [vmem:[#allocation8 + $0x78] sm:$0xf0]  ;;  %v1297_v13 = vld [vmem:[#allocation8 + $0x48] sm:$0xf]  ;;  %v1698_v14 = vld [vmem:[#allocation8 + $0x54] sm:$0xf0] }
  0x4e   :  { %731 = vmatpush.bf16.msrb.mxu3 %v1490_v9  ;;  %v1318_v9 = vor.u32 %v1700_v6, %v1315_v7  ;;  %v1730_v17 = vld [vmem:[#allocation8 + $0x154] sm:$0xf0]  ;;  %v1696_v18 = vld [vmem:[#allocation8 + $0x4c] sm:$0xf]  ;;  %v1299_v19 = vld [vmem:[#allocation8 + $0x58] sm:$0xf0] }
  0x4f   :  { %694 = vmatpush.bf16.msrb.mxu0 %v1326_v60  ;;  %v1458_v60 = vor.u32 %v1738_v57, %v1457_v55  ;;  %v1427_v23 = vld [vmem:[#allocation8 + $0x158] sm:$0xf0]  ;;  %v1281_v24 = vld [vmem:[#allocation8 + $0x28] sm:$0xf]  ;;  %v1694_v26 = vld [vmem:[#allocation8 + $0x34] sm:$0xf0] }
  0x50   :  { %707 = vmatpush.bf16.msrb.mxu1 %v1454_v1  ;;  %v1313_v1 = vld [vmem:[#allocation8 + $0x68] sm:$0xf]  ;;  %v1726_v28 = vld [vmem:[#allocation8 + $0x134] sm:$0xf0]  ;;  %v1282_v29 = vor.u32 %v1694_v26, %v1281_v24  ;;  %v1692_v30 = vld [vmem:[#allocation8 + $0x2c] sm:$0xf] }
  0x51   :  { %719 = vmatpush.bf16.msrb.mxu2 %v1346_v44  ;;  %v1314_v4 = vor.u32 %v1702_v2, %v1313_v1  ;;  %v1409_v27 = vld [vmem:[#allocation8 + $0x128] sm:$0xf]  ;;  %v1411_v35 = vld [vmem:[#allocation8 + $0x138] sm:$0xf0]  ;;  %v1690_v37 = vld [vmem:[#allocation8 + $0x14] sm:$0xf0] }
  0x52   :  { %732 = vmatpush.bf16.msrb.mxu3 %v1474_v48  ;;  %v1265_v36 = vld [vmem:[#allocation8 + $0x8] sm:$0xf]  ;;  %v1688_v41 = vld [vmem:[#allocation8 + $0xc] sm:$0xf]  ;;  %v1267_v42 = vld [vmem:[#allocation8 + $0x18] sm:$0xf0] }
  0x53   :  { %695 = vmatpush.bf16.msrb.mxu0 %v1310_v8  ;;  %v1442_v8 = vor.u32 %v1734_v5, %v1441_v3  ;;  %v1720_v43 = vld [vmem:[#allocation8 + $0x10c] sm:$0xf]  ;;  %v1395_v44 = vld [vmem:[#allocation8 + $0x118] sm:$0xf0]  ;;  %v1266_v45 = vor.u32 %v1690_v37, %v1265_v36  ;;  %v1270_v47 = vor.u32 %v1688_v41, %v1267_v42  ;;  %v1765_v1 = vld [vmem:[#allocation11 + $0x70] sm:$0xff]  ;;  %s2022_s25 = smov [#allocation14]  }
  0x54   :  { %708 = vmatpush.bf16.msrb.mxu1 %v1438_v10  ;;  %v1732_v10 = vld [vmem:[#allocation8 + $0x16c] sm:$0xf]  ;;  %v1398_v48 = vor.u32 %v1720_v43, %v1395_v44  ;;  %v1766_v59 = vld [vmem:[#allocation11 + $0x78] sm:$0xff]  ;;  %v1757_v2 = vld [vmem:[#allocation11 + $0x30] sm:$0xff]  ;;  %s1176_s26 = sshll.u32 %s2022_s25, 4  ;;  %s1178_s3 = sshll.u32 %s2112_s9, 4  ;;  %s1177_s26 = int_to_ptr.vmem [resolvable:$true] %s1176_s26  ;;  %s1179_s3 = int_to_ptr.hbm [resolvable:$true] %s1178_s3 }
  0x55   :  { %720 = vmatpush.bf16.msrb.mxu2 %v1330_v56  ;;  %v1446_v12 = vor.u32 %v1732_v10, %v1443_v11  ;;  %v1782_v62 = vld [vmem:[#allocation11 + $0xf8] sm:$0xff]  ;;  %v1781_v3 = vld [vmem:[#allocation11 + $0xf0] sm:$0xff]  ;;  %v1756_v5 = vld [vmem:[#allocation11 + $0x28] sm:$0xff] }
  0x56   :  { %733 = vmatpush.bf16.msrb.mxu3 %v1458_v60  ;;  %v1758_v60 = vld [vmem:[#allocation11 + $0x38] sm:$0xff]  ;;  %v1763_v6 = vld [vmem:[#allocation11 + $0x60] sm:$0xff]  ;;  %v1769_v26 = vld [vmem:[#allocation11 + $0x90] sm:$0xff] }
  0x57   :  { %696 = vmatpush.bf16.msrb.mxu0 %v1294_v15  ;;  %v1425_v15 = vld [vmem:[#allocation8 + $0x148] sm:$0xf]  ;;  %v1754_v10 = vld [vmem:[#allocation11 + $0x18] sm:$0xff]  ;;  %v1789_v36 = vld [vmem:[#allocation13 + $0x30] sm:$0xff] }
  0x58   :  { %709 = vmatpush.bf16.msrb.mxu1 %v1422_v16  ;;  %v1298_v16 = vor.u32 %v1698_v14, %v1297_v13  ;;  %v1426_v20 = vor.u32 %v1730_v17, %v1425_v15  ;;  %v1755_v7 = vld [vmem:[#allocation11 + $0x20] sm:$0xff]  ;;  %v1774_v11 = vld [vmem:[#allocation11 + $0xb8] sm:$0xff]  ;;  %v1780_v13 = vld [vmem:[#allocation11 + $0xe8] sm:$0xff] }
  0x59   :  { %721 = vmatpush.bf16.msrb.mxu2 %v1314_v4  ;;  %v1764_v4 = vld [vmem:[#allocation11 + $0x68] sm:$0xff]  ;;  %v1753_v14 = vld [vmem:[#allocation11 + $0x10] sm:$0xff]  ;;  %v1779_v17 = vld [vmem:[#allocation11 + $0xe0] sm:$0xff] }
  0x5a   :  { %734 = vmatpush.bf16.msrb.mxu3 %v1442_v8  ;;  %v1762_v8 = vld [vmem:[#allocation11 + $0x58] sm:$0xff]  ;;  %v1773_v15 = vld [vmem:[#allocation11 + $0xb0] sm:$0xff] }
  0x5b   :  { %697 = vmatpush.bf16.msrb.mxu0 %v1278_v21  ;;  %v1302_v21 = vor.u32 %v1696_v18, %v1299_v19  ;;  %v1752_v18 = vld [vmem:[#allocation11 + $0x8] sm:$0xff]  ;;  %v1770_v24 = vld [vmem:[#allocation11 + $0x98] sm:$0xff] }
  0x5c   :  { %710 = vmatpush.bf16.msrb.mxu1 %v1406_v22  ;;  %v1728_v22 = vld [vmem:[#allocation8 + $0x14c] sm:$0xf] }
  0x5d   :  { %v1430_v25 = vor.u32 %v1728_v22, %v1427_v23  ;;  %722 = vmatpush.bf16.msrb.mxu2 %v1298_v16  ;;  %v1759_v16 = vld [vmem:[#allocation11 + $0x40] sm:$0xff]  ;;  %v1772_v19 = vld [vmem:[#allocation11 + $0xa8] sm:$0xff]  ;;  %v1777_v23 = vld [vmem:[#allocation11 + $0xd0] sm:$0xff] }
  0x5e   :  { %735 = vmatpush.bf16.msrb.mxu3 %v1426_v20  ;;  %v1778_v20 = vld [vmem:[#allocation11 + $0xd8] sm:$0xff]  ;;  %v1771_v22 = vld [vmem:[#allocation11 + $0xa0] sm:$0xff] }
  0x5f   :  { %698 = vmatpush.bf16.msrb.mxu0 %v1262_v31  ;;  %v1283_v31 = vld [vmem:[#allocation8 + $0x38] sm:$0xf0] }
  0x60   :  { %711 = vmatpush.bf16.msrb.mxu1 %v1390_v32  ;;  %v1724_v32 = vld [vmem:[#allocation8 + $0x12c] sm:$0xf] }
  0x61   :  { %v1414_v38 = vor.u32 %v1724_v32, %v1411_v35  ;;  %723 = vmatpush.bf16.msrb.mxu2 %v1282_v29  ;;  %v138_v29 = vld [vmem:[#allocation10] sm:$0xf] }
  0x62   :  { %v1790_v32 = vld [vmem:[#allocation13 + $0x38] sm:$0xff] }
  0x63   :  { %743 = vmatpush.bf16.msra.mxu0 %v1382_v33  ;;  %v1410_v33 = vor.u32 %v1726_v28, %v1409_v27  ;;  %v1775_v27 = vld [vmem:[#allocation11 + $0xc0] sm:$0xff]  ;;  %v1768_v28 = vld [vmem:[#allocation11 + $0x88] sm:$0xff] }
  0x64   :  { %756 = vmatpush.bf16.msra.mxu1 %v1510_v34  ;;  %v1286_v34 = vor.u32 %v1692_v30, %v1283_v31  ;;  %v1767_v30 = vld [vmem:[#allocation11 + $0x80] sm:$0xff]  ;;  %v338_v31 = vperm.slane %v138_v29, 1 }
  0x65   :  { %736 = vmatpush.bf16.msrb.mxu3 %v1410_v33  ;;  %724 = vmatpush.bf16.msrb.mxu2 %v1266_v45 }
  0x67   :  { %744 = vmatpush.bf16.msra.mxu0 %v1366_v39  ;;  %v1393_v39 = vld [vmem:[#allocation8 + $0x108] sm:$0xf] }
  0x68   :  { %757 = vmatpush.bf16.msra.mxu1 %v1494_v40  ;;  %v1722_v40 = vld [vmem:[#allocation8 + $0x114] sm:$0xf0] }
  0x69   :  { %v1394_v46 = vor.u32 %v1722_v40, %v1393_v39 }
  0x6b   :  { %745 = vmatpush.bf16.msra.mxu0 %v1350_v49  ;;  %737 = vmatpush.bf16.msrb.mxu3 %v1394_v46  ;;  %v137_v49 = vld [vmem:[#allocation7] sm:$0x3] }
  0x6c   :  { %758 = vmatpush.bf16.msra.mxu1 %v1478_v52  ;;  %v158_v50 = vperm.slane %v137_v49, 0  ;;  %v159_v51 = vperm.slane %v137_v49, 1  ;;  %v340_v49 = vperm.slane %v138_v29, 3 }
  0x6f   :  { %746 = vmatpush.bf16.msra.mxu0 %v1334_v61 }
  0x70   :  { %759 = vmatpush.bf16.msra.mxu1 %v1462_v0 }
  0x73   :  { %747 = vmatpush.bf16.msra.mxu0 %v1318_v9  ;;  %v1761_v9 = vld [vmem:[#allocation11 + $0x50] sm:$0xff] }
  0x74   :  { %760 = vmatpush.bf16.msra.mxu1 %v1446_v12  ;;  %v1760_v12 = vld [vmem:[#allocation11 + $0x48] sm:$0xff] }
  0x77   :  { %748 = vmatpush.bf16.msra.mxu0 %v1302_v21  ;;  %v1751_v21 = vld [vmem:[#allocation11] sm:$0xff] }
  0x78   :  { %761 = vmatpush.bf16.msra.mxu1 %v1430_v25  ;;  %v1776_v25 = vld [vmem:[#allocation11 + $0xc8] sm:$0xff] }
  0x7b   :  { %749 = vmatpush.bf16.msra.mxu0 %v1286_v34 }
  0x7c   :  { %762 = vmatpush.bf16.msra.mxu1 %v1414_v38  ;;  %v337_v38 = vperm.slane %v138_v29, 0 }
  0x7f   :  { %750 = vmatpush.bf16.msra.mxu0 %v1270_v47 }
  0x80   :  { %763 = vmatpush.bf16.msra.mxu1 %v1398_v48 }
  0xbf   :  { %v251_v52 = vpop.f32.mrf.mxu0 }
  0xc0   :  { %v252_v53 = vadd.f32 %v251_v52, %v158_v50  ;;  %v264_v54 = vpop.f32.mrf.mxu1 }
  0xc1   :  { %v265_v55 = vadd.f32 %v264_v54, %v159_v51 }
  0xc2   :  { %v268_v56 = vmax.f32 %v252_v53, 0.0 }
  0xc3   :  { %v269_v57 = vmax.f32 %v265_v55, 0.0 }
  0xc4   :  { %v270_v58 = vpack.c.bf16 %v268_v56, %v268_v56  ;;  %v339_v56 = vperm.slane %v138_v29, 2 }
  0xc5   :  { %v271_v61 = vpack.c.bf16 %v269_v57, %v269_v57 }
  0xc6   :  { %673 = vmatmul.bf16.vlgmr.msra.gmra.mxu2 %v270_v58  ;;  %699 = vmatmul.bf16.vlgmr.msrb.gmra.mxu0 %v270_v58 }
  0xc7   :  { %686 = vmatmul.bf16.vlgmr.msra.gmra.mxu3 %v271_v61  ;;  %712 = vmatmul.bf16.vlgmr.msrb.gmra.mxu1 %v271_v61  ;;  %v253_v63 = vpop.f32.mrf.mxu0 }
  0xc8   :  { %v266_v0 = vpop.f32.mrf.mxu1  ;;  %1049 = vmatpush.bf16.msra.mxu3 %v1766_v59  ;;  %1036 = vmatpush.bf16.msra.mxu2 %v1758_v60 }
  0xc9   :  { %1075 = vmatpush.bf16.msrb.mxu1 %v1782_v62  ;;  %1062 = vmatpush.bf16.msrb.mxu0 %v1774_v11 }
  0xcc   :  { %1050 = vmatpush.bf16.msra.mxu3 %v1765_v1  ;;  %1037 = vmatpush.bf16.msra.mxu2 %v1757_v2 }
  0xcd   :  { %1076 = vmatpush.bf16.msrb.mxu1 %v1781_v3  ;;  %1063 = vmatpush.bf16.msrb.mxu0 %v1773_v15 }
  0xd0   :  { %1051 = vmatpush.bf16.msra.mxu3 %v1764_v4  ;;  %1038 = vmatpush.bf16.msra.mxu2 %v1756_v5  ;;  %v1788_v5 = vld [vmem:[#allocation13 + $0x28] sm:$0xff] }
  0xd1   :  { %1077 = vmatpush.bf16.msrb.mxu1 %v1780_v13  ;;  %1064 = vmatpush.bf16.msrb.mxu0 %v1772_v19  ;;  %v1805_v13 = vld [vmem:[%s2109_s6] ss:$0 sm:$0xff] }
  0xd4   :  { %1052 = vmatpush.bf16.msra.mxu3 %v1763_v6  ;;  %1039 = vmatpush.bf16.msra.mxu2 %v1755_v7  ;;  %v1787_v6 = vld [vmem:[#allocation13 + $0x20] sm:$0xff]  ;;  %v1786_v7 = vld [vmem:[#allocation13 + $0x18] sm:$0xff] }
  0xd5   :  { %1078 = vmatpush.bf16.msrb.mxu1 %v1779_v17  ;;  %1065 = vmatpush.bf16.msrb.mxu0 %v1771_v22 }
  0xd6   :  { %725 = vmatmul.bf16.vlgmr.msrb.gmra.mxu2 %v270_v58  ;;  %751 = vmatmul.bf16.vlgmr.msra.gmra.mxu0 %v270_v58 }
  0xd7   :  { %738 = vmatmul.bf16.vlgmr.msrb.gmra.mxu3 %v271_v61  ;;  %764 = vmatmul.bf16.vlgmr.msra.gmra.mxu1 %v271_v61 }
  0xd8   :  { %1053 = vmatpush.bf16.msra.mxu3 %v1762_v8  ;;  %1040 = vmatpush.bf16.msra.mxu2 %v1754_v10  ;;  %v1785_v8 = vld [vmem:[#allocation13 + $0x10] sm:$0xff]  ;;  %v1783_v10 = vld [vmem:[#allocation13] sm:$0xff] }
  0xd9   :  { %1079 = vmatpush.bf16.msrb.mxu1 %v1778_v20  ;;  %1066 = vmatpush.bf16.msrb.mxu0 %v1770_v24 }
  0xdc   :  { %1054 = vmatpush.bf16.msra.mxu3 %v1761_v9  ;;  %1041 = vmatpush.bf16.msra.mxu2 %v1753_v14  ;;  %v1784_v9 = vld [vmem:[#allocation13 + $0x8] sm:$0xff] }
  0xdd   :  { %1080 = vmatpush.bf16.msrb.mxu1 %v1777_v23  ;;  %1067 = vmatpush.bf16.msrb.mxu0 %v1769_v26  ;;  %v1806_v26 = vld [vmem:[%s2111_s8] ss:$0 sm:$0xff] }
  0xe0   :  { %1055 = vmatpush.bf16.msra.mxu3 %v1760_v12  ;;  %1042 = vmatpush.bf16.msra.mxu2 %v1752_v18 }
  0xe1   :  { %1081 = vmatpush.bf16.msrb.mxu1 %v1776_v25  ;;  %1068 = vmatpush.bf16.msrb.mxu0 %v1768_v28 }
  0xe4   :  { %1056 = vmatpush.bf16.msra.mxu3 %v1759_v16  ;;  %1043 = vmatpush.bf16.msra.mxu2 %v1751_v21 }
  0xe5   :  { %1082 = vmatpush.bf16.msrb.mxu1 %v1775_v27  ;;  %1069 = vmatpush.bf16.msrb.mxu0 %v1767_v30 }
  0xe8   :  { %1157 = vmatpush.bf16.msrb.mxu2 %v1790_v32 }
  0xec   :  { %1158 = vmatpush.bf16.msrb.mxu2 %v1789_v36 }
  0xf0   :  { %1159 = vmatpush.bf16.msrb.mxu2 %v1788_v5 }
  0xf4   :  { %1160 = vmatpush.bf16.msrb.mxu2 %v1787_v6 }
  0xf8   :  { %1161 = vmatpush.bf16.msrb.mxu2 %v1786_v7 }
  0xfc   :  { %1162 = vmatpush.bf16.msrb.mxu2 %v1785_v8 }
 0x100   :  { %1163 = vmatpush.bf16.msrb.mxu2 %v1784_v9 }
 0x104   :  { %1164 = vmatpush.bf16.msrb.mxu2 %v1783_v10 }
 0x143   :  { %v700_v33 = vpop.f32.mrf.mxu0 }
 0x144   :  { %v701_v34 = vadd.f32 %v700_v33, %v338_v31  ;;  %v713_v35 = vpop.f32.mrf.mxu1 }
 0x146   :  { %v714_v37 = vadd.f32 %v713_v35, %v701_v34 }
 0x148   :  { %v770_v39 = vmax.f32 %v714_v37, 0.0 }
 0x149   :  { %v674_v40 = vpop.f32.mrf.mxu2 }
 0x14a   :  { %v774_v41 = vpack.c.bf16 %v770_v39, %v770_v39  ;;  %v675_v42 = vadd.f32 %v674_v40, %v337_v38  ;;  %v687_v43 = vpop.f32.mrf.mxu3 }
 0x14b   :  { %v702_v44 = vpop.f32.mrf.mxu0 }
 0x14c   :  { %v688_v45 = vadd.f32 %v687_v43, %v675_v42  ;;  %v715_v46 = vpop.f32.mrf.mxu1  ;;  %1057 = vmatmul.bf16.vlgmr.msra.gmra.mxu3 %v774_v41 }
 0x14e   :  { %v769_v47 = vmax.f32 %v688_v45, 0.0 }
 0x150   :  { %v773_v48 = vpack.c.bf16 %v769_v47, %v769_v47 }
 0x151   :  { %v676_v50 = vpop.f32.mrf.mxu2 }
 0x152   :  { %v689_v51 = vpop.f32.mrf.mxu3  ;;  %1044 = vmatmul.bf16.vlgmr.msra.gmra.mxu2 %v773_v48 }
 0x153   :  { %v752_v52 = vpop.f32.mrf.mxu0 }
 0x154   :  { %v753_v53 = vadd.f32 %v752_v52, %v340_v49  ;;  %v765_v54 = vpop.f32.mrf.mxu1 }
 0x156   :  { %v766_v55 = vadd.f32 %v765_v54, %v753_v53 }
 0x158   :  { %v772_v57 = vmax.f32 %v766_v55, 0.0 }
 0x159   :  { %v726_v58 = vpop.f32.mrf.mxu2 }
 0x15a   :  { %v776_v59 = vpack.c.bf16 %v772_v57, %v772_v57  ;;  %v727_v60 = vadd.f32 %v726_v58, %v339_v56  ;;  %v739_v61 = vpop.f32.mrf.mxu3 }
 0x15b   :  { %v754_v62 = vpop.f32.mrf.mxu0 }
 0x15c   :  { %v740_v63 = vadd.f32 %v739_v61, %v727_v60  ;;  %v767_v0 = vpop.f32.mrf.mxu1  ;;  %1083 = vmatmul.bf16.vlgmr.msrb.gmra.mxu1 %v776_v59 }
 0x15e   :  { %v771_v1 = vmax.f32 %v740_v63, 0.0 }
 0x160   :  { %v775_v2 = vpack.c.bf16 %v771_v1, %v771_v1 }
 0x161   :  { %v728_v3 = vpop.f32.mrf.mxu2 }
 0x162   :  { %v741_v4 = vpop.f32.mrf.mxu3  ;;  %1070 = vmatmul.bf16.vlgmr.msrb.gmra.mxu0 %v775_v2 }
 0x1cf   :  { %v1058_v11 = vpop.f32.mrf.mxu3 }
 0x1d5   :  { %v1045_v12 = vpop.f32.mrf.mxu2 }
 0x1d6   :  { %v1046_v16 = vadd.f32 %v1805_v13, %v1045_v12 }
 0x1d7   :  { %v1060_v14 = vpop.f32.mrf.mxu3 }
 0x1d8   :  { %v1059_v18 = vadd.f32 %v1058_v11, %v1046_v16 }
 0x1d9   :  { %v1084_v15 = vpop.f32.mrf.mxu1 }
 0x1dd   :  { %v1047_v17 = vpop.f32.mrf.mxu2 }
 0x1df   :  { %v1071_v19 = vpop.f32.mrf.mxu0 }
 0x1e0   :  { %v1072_v20 = vadd.f32 %v1071_v19, %v1059_v18 }
 0x1e1   :  { %v1086_v21 = vpop.f32.mrf.mxu1 }
 0x1e2   :  { %v1085_v22 = vadd.f32 %v1084_v15, %v1072_v20 }
 0x1e4   :  { %v1088_v23 = vmax.f32 %v1085_v22, 0.0 }
 0x1e6   :  { %v1089_v24 = vpack.c.bf16 %v1088_v23, %v1088_v23 }
 0x1e7   :  { %v1073_v25 = vpop.f32.mrf.mxu0 }
 0x1e8   :  { %1165 = vmatmul.bf16.vlgmr.msrb.gmra.mxu2 %v1089_v24 }
 0x26b   :  { %v1166_v27 = vpop.f32.mrf.mxu2 }
 0x26c   :  { %v1167_v28 = vadd.f32 %v1806_v26, %v1166_v27 }
 0x26e   :  { %1170 = vst [vmem:[#allocation14] sm:$0xff] %v1167_v28 }
 0x26f   :  { %1181 = dma.vmem_to_hbm [thread:$0]  %s1177_s26, 128, %s1179_s3, [#allocation4]  }
 0x273   :  { %v1168_v29 = vpop.f32.mrf.mxu2 }
 0x274   :  { %2007 = dma.done.wait [#allocation4], 128  }
 0x275   :  { %2008 = vsyncadd [#allocation4], 4294967168 }
 0x276   :  { %1186 = vsyncpa [#allocation3], 1 }
 0x277   :  { %1187 = vsyncpa [#allocation6], 1 }
 0x278   :  { %1188 = vsyncpa [#allocation9], 1 }
 0x279   :  { %1189 = vsyncpa [#allocation12], 1 }
 0x27a   :  { %1190 = vsyncpa [#allocation4], 1 }

</bundles_post_ra>
